<compile_context>
chip_gen: v5e
topology: v5e:2x2
jax: 0.10.0
libtpu: 0.0.40
codegen_flags: <defaults>
</compile_context>

<pallas_src>
import functools

import jax
import jax.numpy as jnp
from jax.experimental import pallas as pl
from jax.experimental.pallas import tpu as pltpu

EPS = 1e-5


def _vmem_limit_bytes():
    """~3/4 of physical VMEM (128 MiB v5e/v6e -> 96 MiB, 64 MiB v7x -> 48 MiB)."""
    try:
        cap = pltpu.get_tpu_info().vmem_capacity_bytes
        return int(min(cap * 3 // 4, 100 * 1024 * 1024))
    except Exception:  # conservative fallback, safe on all generations
        return 48 * 1024 * 1024


# ----------------------------------------------------------------------------
# Kernel 1: fused ResNet BasicBlock (the FCN `base`)
#   out = relu( bn2(conv2( relu(bn1(conv1(x))) )) + x )
# working layout: rows = N*H (sublane axis), lanes = W*C (lane axis, 128 lanes)
# ----------------------------------------------------------------------------
def _basic_block_kernel(x_ref, wk1_ref, wk2_ref, gb_ref, red_ref, bcast_ref,
                        out_ref, *, height, width):
    xf = x_ref[...].astype(jnp.float32)                    # (M, W*C)
    m_rows = xf.shape[0]

    # image-row boundary masks computed in-kernel from an iota (no (M,2) mask DMA);
    # offsetting by program_id * tile keeps this correct once a row-tiled grid exists.
    h_idx = jax.lax.broadcasted_iota(jnp.int32, (m_rows, 1), 0) % height
    m_up = (h_idx != 0).astype(jnp.float32)                # kh=0 tap invalid at h == 0
    m_dn = (h_idx != height - 1).astype(jnp.float32)       # kh=2 tap invalid at h == H-1

    gb = gb_ref[...].astype(jnp.float32)                   # (4, W*C): g1, b1, g2, b2
    red = red_ref[...]                                     # (W*C, C) per-channel reduce
    bcast = bcast_ref[...]                                 # (C, W*C) per-channel broadcast
    dot_dtype = wk1_ref.dtype
    inv_count = 1.0 / float(m_rows * width)                # count per channel = N*H*W

    def conv3x3(vf, wk_ref):
        # vf: (M, W*Cin) f32; wk_ref: (3, W*Cin, W*Cout) banded block-Toeplitz, one
        # per kh tap: kw taps + channel contraction collapse into one K = W*Cin MXU
        # contraction and the W zero-padding is baked into the weights.
        acc = jnp.dot(vf.astype(dot_dtype), wk_ref[1],
                      preferred_element_type=jnp.float32)
        v_up = (pltpu.roll(vf, shift=1, axis=0) * m_up).astype(dot_dtype)
        acc = acc + jnp.dot(v_up, wk_ref[0], preferred_element_type=jnp.float32)
        v_dn = (pltpu.roll(vf, shift=m_rows - 1, axis=0) * m_dn).astype(dot_dtype)
        acc = acc + jnp.dot(v_dn, wk_ref[2], preferred_element_type=jnp.float32)
        return acc                                         # (M, W*Cout) f32

    def batchnorm(acc, gamma_t, beta_t):
        # training-mode BN, two-pass statistics; the per-channel reduce + rebroadcast
        # over the (w, c) lane axis is a pair of small rectangular matmuls instead of
        # the old (W*C, W*C) indicator matrix.
        s = jnp.sum(acc, axis=0, keepdims=True)
        mean_t = jnp.dot(jnp.dot(s, red, preferred_element_type=jnp.float32) * inv_count,
                         bcast, preferred_element_type=jnp.float32)
        d = acc - mean_t
        ss = jnp.sum(d * d, axis=0, keepdims=True)
        var_t = jnp.dot(jnp.dot(ss, red, preferred_element_type=jnp.float32) * inv_count,
                        bcast, preferred_element_type=jnp.float32)
        return d * jax.lax.rsqrt(var_t + EPS) * gamma_t + beta_t

    # half 1: relu(bn1(conv1(x)))
    y = jnp.maximum(batchnorm(conv3x3(xf, wk1_ref), gb[0:1, :], gb[1:2, :]), 0.0)
    # half 2: relu(bn2(conv2(y)) + x) -- intermediate never leaves the kernel
    y2 = batchnorm(conv3x3(y, wk2_ref), gb[2:3, :], gb[3:4, :]) + xf
    out_ref[...] = jnp.maximum(y2, 0.0).astype(out_ref.dtype)


# ----------------------------------------------------------------------------
# Kernel 2: fused Head, K-tiled over in_f
#   Flatten -> BN1d -> Dropout -> Linear -> ReLU -> BN1d -> Dropout -> Linear
# ----------------------------------------------------------------------------
def _head_kernel(x_ref, g1_ref, b1_ref, w1_ref, lb1_ref,
                 g2_ref, b2_ref, w2_ref, lb2_ref, out_ref, acc_ref):
    k = pl.program_id(0)

    @pl.when(k == 0)
    def _init():
        acc_ref[...] = jnp.zeros_like(acc_ref)

    x = x_ref[...].astype(jnp.float32)                     # (N, tk)
    inv_n = 1.0 / x.shape[0]

    # BatchNorm1d over the batch: per-feature stats are fully local to this K tile.
    mean = jnp.sum(x, axis=0, keepdims=True) * inv_n
    xc = x - mean
    var = jnp.sum(xc * xc, axis=0, keepdims=True) * inv_n
    h = xc * jax.lax.rsqrt(var + EPS) * g1_ref[...] + b1_ref[...]
    # TODO(synk): nn.Dropout(0.75) is stochastic in train mode; modeled as the
    # eval-mode identity (could be added with pltpu.prng_seed / prng_random_bits).
    acc_ref[...] += jnp.dot(h.astype(w1_ref.dtype), w1_ref[...],
                            preferred_element_type=jnp.float32)

    @pl.when(k == pl.num_programs(0) - 1)
    def _finalize():
        h1 = jnp.maximum(acc_ref[...] + lb1_ref[...], 0.0)   # Linear bias + ReLU
        m2 = jnp.sum(h1, axis=0, keepdims=True) * inv_n
        c2 = h1 - m2
        v2 = jnp.sum(c2 * c2, axis=0, keepdims=True) * inv_n
        h2 = c2 * jax.lax.rsqrt(v2 + EPS) * g2_ref[...] + b2_ref[...]
        out = jnp.dot(h2.astype(w2_ref.dtype), w2_ref[...],
                      preferred_element_type=jnp.float32) + lb2_ref[...]
        out_ref[...] = out.astype(out_ref.dtype)


# ----------------------------------------------------------------------------
# Wrappers
# ----------------------------------------------------------------------------
def _build_row_toeplitz(w_hwio, width):
    """(KH,KW,Cin,Cout) conv weight -> (KH, W*Cin, W*Cout) banded matrices.

    wk[kh][wi*Cin+ci, wo*Cout+co] = w[kh, kw, ci, co] where wi == wo + kw - KW//2;
    out-of-range taps are absent => 'same' zero padding along W for free.
    TODO(synk): at production channel counts (Cin>=64) or large W switch to per-kw-tap
    matmuls with K=Cin (exact FLOPs) or tile the W axis so each block fits VMEM."""
    kh_dim, kw_dim, cin, cout = w_hwio.shape
    wo = jnp.arange(width)
    wi = jnp.arange(width)
    dw = jnp.arange(kw_dim) - (kw_dim // 2)
    sel = (wi[None, :, None] == (wo[None, None, :] + dw[:, None, None]))
    sel = sel.astype(w_hwio.dtype)                          # (KW, W, W)
    wk = jnp.einsum("kio,hkcd->hicod", sel, w_hwio)         # (KH, W, Cin, W, Cout)
    return wk.reshape(kh_dim, width * cin, width * cout)


def basic_block_forward(x_nchw, p, *, use_bf16=False):
    """BasicBlock forward (the FCN `base`). Input NCHW; output lane-dense (N*H, W*C)."""
    n, cin, h, w = x_nchw.shape
    planes = p["w1"].shape[-1]
    assert cin == planes, "downsample=None BasicBlock requires inplanes == planes"
    wdt = jnp.bfloat16 if use_bf16 else jnp.float32
    out_dt = jnp.bfloat16 if use_bf16 else jnp.float32

    # lane-dense working layout: (N*H, W*C); pick shapes with W*C a multiple of 128.
    x2d = jnp.transpose(x_nchw, (0, 2, 3, 1)).reshape(n * h, w * cin).astype(jnp.float32)

    wk1 = _build_row_toeplitz(p["w1"].astype(jnp.float32), w).astype(wdt)
    wk2 = _build_row_toeplitz(p["w2"].astype(jnp.float32), w).astype(wdt)
    # gamma/beta of both BN layers, tiled along W, packed into a single operand
    gb = jnp.stack([jnp.tile(p["g1"], w), jnp.tile(p["b1"], w),
                    jnp.tile(p["g2"], w), jnp.tile(p["b2"], w)]).astype(jnp.float32)
    # rectangular per-channel reduce / broadcast matrices (lane index = w*C + c)
    lane_ch = jnp.arange(w * planes) % planes
    red = (lane_ch[:, None] == jnp.arange(planes)[None, :]).astype(jnp.float32)  # (L, C)
    bcast = red.T                                                                 # (C, L)

    out2d = pl.pallas_call(
        functools.partial(_basic_block_kernel, height=h, width=w),
        out_shape=jax.ShapeDtypeStruct((n * h, w * planes), out_dt),
        in_specs=[pl.BlockSpec(memory_space=pltpu.MemorySpace.VMEM)] * 6,
        out_specs=pl.BlockSpec(memory_space=pltpu.MemorySpace.VMEM),
        compiler_params=pltpu.CompilerParams(vmem_limit_bytes=_vmem_limit_bytes()),
    )(x2d, wk1, wk2, gb, red, bcast)
    # TODO(synk): production feature maps need a row-tiled grid with a +/-1-row halo
    # for the kh taps, two-pass BN (per-tile sum/sumsq scratch + apply pass) and a
    # leading 'parallel' axis for v7x's two TensorCores; at demo size one resident
    # block is optimal.
    return out2d


def _pick_k_tile(in_f):
    for tk in (512, 256, 128):
        if in_f % tk == 0:
            return tk
    return in_f  # small / odd in_f: single resident block


def head_forward(x_flat, p, *, use_bf16=True):
    """Head forward. Feature order of x_flat must match p's bn1/w1 row order."""
    n, in_f = x_flat.shape
    hidden = p["w1"].shape[1]
    out_f = p["w2"].shape[1]
    wdt = jnp.bfloat16 if use_bf16 else jnp.float32
    tk = _pick_k_tile(in_f)

    return pl.pallas_call(
        _head_kernel,
        out_shape=jax.ShapeDtypeStruct((n, out_f), jnp.float32),
        grid=(in_f // tk,),
        in_specs=[
            pl.BlockSpec((n, tk), lambda k: (0, k)),          # x tile
            pl.BlockSpec((1, tk), lambda k: (0, k)),          # bn1 gamma tile
            pl.BlockSpec((1, tk), lambda k: (0, k)),          # bn1 beta tile
            pl.BlockSpec((tk, hidden), lambda k: (k, 0)),     # w1 K-tile (bf16 stream)
            pl.BlockSpec((1, hidden), lambda k: (0, 0)),      # linear-1 bias
            pl.BlockSpec((1, hidden), lambda k: (0, 0)),      # bn2 gamma
            pl.BlockSpec((1, hidden), lambda k: (0, 0)),      # bn2 beta
            pl.BlockSpec((hidden, out_f), lambda k: (0, 0)),  # w2
            pl.BlockSpec((1, out_f), lambda k: (0, 0)),       # linear-2 bias
        ],
        out_specs=pl.BlockSpec((n, out_f), lambda k: (0, 0)),
        scratch_shapes=[pltpu.VMEM((n, hidden), jnp.float32)],
        compiler_params=pltpu.CompilerParams(
            dimension_semantics=("arbitrary",),
            vmem_limit_bytes=_vmem_limit_bytes()),
    )(x_flat,
      p["bn1_g"].reshape(1, in_f).astype(jnp.float32),
      p["bn1_b"].reshape(1, in_f).astype(jnp.float32),
      p["w1"].astype(wdt),
      p["b1"].reshape(1, hidden).astype(jnp.float32),
      p["bn2_g"].reshape(1, hidden).astype(jnp.float32),
      p["bn2_b"].reshape(1, hidden).astype(jnp.float32),
      p["w2"].astype(wdt),
      p["b2"].reshape(1, out_f).astype(jnp.float32))


def fcn_forward(x_nchw, params, *, use_bf16=True):
    # TODO(synk): FCN.base is an injected submodule with no definition in the spec;
    # modeled as a ResNet BasicBlock (stride=1, no downsample), as in prior versions.
    n, c, h, w = x_nchw.shape
    feat2d = basic_block_forward(x_nchw, params["base"], use_bf16=use_bf16)
    flat = feat2d.reshape(n, h * w * c)   # free reshape; NO NHWC->NCHW transpose

    # Fold the PyTorch flatten order (c, h, w) into the head parameters instead of
    # transposing the feature map: permute bn1 gamma/beta and w1 rows. This is a
    # trace-time gather (could be pre-folded offline once per checkpoint).
    perm = (jnp.arange(c)[None, None, :] * (h * w)
            + jnp.arange(h)[:, None, None] * w
            + jnp.arange(w)[None, :, None]).reshape(-1)     # new (h,w,c) -> old (c,h,w)
    hp = params["head"]
    head_p = dict(hp, bn1_g=hp["bn1_g"][perm], bn1_b=hp["bn1_b"][perm],
                  w1=hp["w1"][perm, :])
    return head_forward(flat, head_p, use_bf16=use_bf16)


# ---------------- pure-JAX reference (correctness sanity check) --------------
def _ref_basic_block(x_nchw, p):
    def conv(x, w_hwio):
        w_oihw = jnp.transpose(w_hwio, (3, 2, 0, 1))
        return jax.lax.conv_general_dilated(
            x, w_oihw, window_strides=(1, 1), padding=((1, 1), (1, 1)),
            dimension_numbers=("NCHW", "OIHW", "NCHW"))

    def bn(x, g, b):
        mean = jnp.mean(x, axis=(0, 2, 3), keepdims=True)
        var = jnp.mean((x - mean) ** 2, axis=(0, 2, 3), keepdims=True)
        y = (x - mean) * jax.lax.rsqrt(var + EPS)
        return y * g.reshape(1, -1, 1, 1) + b.reshape(1, -1, 1, 1)

    out = jnp.maximum(bn(conv(x_nchw, p["w1"]), p["g1"], p["b1"]), 0.0)
    out = bn(conv(out, p["w2"]), p["g2"], p["b2"]) + x_nchw
    return jnp.maximum(out, 0.0)


def _ref_head(x_flat, p):
    def bn(v, g, b):
        mean = jnp.mean(v, axis=0, keepdims=True)
        var = jnp.mean((v - mean) ** 2, axis=0, keepdims=True)
        return (v - mean) * jax.lax.rsqrt(var + EPS) * g[None, :] + b[None, :]

    h = bn(x_flat, p["bn1_g"], p["bn1_b"])
    h = jnp.maximum(jnp.dot(h, p["w1"]) + p["b1"][None, :], 0.0)
    h = bn(h, p["bn2_g"], p["bn2_b"])
    return jnp.dot(h, p["w2"]) + p["b2"][None, :]


def fcn_reference(x_nchw, params):
    feat = _ref_basic_block(x_nchw, params["base"])
    return _ref_head(feat.reshape(feat.shape[0], -1), params["head"])


if __name__ == "__main__":
    key = jax.random.PRNGKey(0)
    ks = jax.random.split(key, 6)

    # W*C = 128 -> full 128-lane working layout (lane-dense vst, full vregs, MXU-deep K)
    N, inplanes, H, W = 2, 8, 16, 16
    planes = inplanes                       # expansion=1, downsample=None
    in_f = planes * H * W                   # 2048 flattened features into the Head
    hidden, out_f = 512, 1

    x = jax.random.normal(ks[0], (N, inplanes, H, W), jnp.float32)  # NCHW input

    params = {
        "base": {
            # conv weights stored HWIO; BatchNorm2d default init: weight=1, bias=0
            "w1": 0.1 * jax.random.normal(ks[1], (3, 3, inplanes, planes), jnp.float32),
            "g1": jnp.ones((planes,), jnp.float32),
            "b1": jnp.zeros((planes,), jnp.float32),
            "w2": 0.1 * jax.random.normal(ks[2], (3, 3, planes, planes), jnp.float32),
            "g2": jnp.ones((planes,), jnp.float32),
            "b2": jnp.zeros((planes,), jnp.float32),
        },
        "head": {
            "bn1_g": jnp.ones((in_f,), jnp.float32),
            "bn1_b": jnp.zeros((in_f,), jnp.float32),
            # Linear weights stored already transposed: y = x @ w + b
            "w1": (1.0 / jnp.sqrt(in_f)) *
                  jax.random.normal(ks[3], (in_f, hidden), jnp.float32),
            "b1": 0.01 * jax.random.normal(ks[4], (hidden,), jnp.float32),
            "bn2_g": jnp.ones((hidden,), jnp.float32),
            "bn2_b": jnp.zeros((hidden,), jnp.float32),
            "w2": (1.0 / jnp.sqrt(hidden)) *
                  jax.random.normal(ks[5], (hidden, out_f), jnp.float32),
            "b2": jnp.zeros((out_f,), jnp.float32),
        },
    }

    # full FCN forward, f32 MXU path: tight check against the pure-JAX reference
    out = jax.block_until_ready(fcn_forward(x, params, use_bf16=False))
    ref = jax.block_until_ready(fcn_reference(x, params))
    assert out.shape == (N, out_f)
    assert float(jnp.max(jnp.abs(out - ref))) < 5e-3

    # base (BasicBlock) kernel alone, compared in its native (N*H, W*C) layout
    feat2d = jax.block_until_ready(basic_block_forward(x, params["base"]))
    feat_ref = jax.block_until_ready(_ref_basic_block(x, params["base"]))
    ref2d = jnp.transpose(feat_ref, (0, 2, 3, 1)).reshape(N * H, W * planes)
    assert float(jnp.max(jnp.abs(feat2d - ref2d))) < 1e-4

    # bf16-MXU / bf16-writeback variant of the base, looser tolerance
    feat2d_bf16 = jax.block_until_ready(
        basic_block_forward(x, params["base"], use_bf16=True))
    assert float(jnp.max(jnp.abs(feat2d_bf16.astype(jnp.float32) - ref2d))) < 5e-2

    # full FCN perf path (bf16 weight streaming + bf16 feature map); batch-2
    # BatchNorm1d amplifies bf16 rounding so only sanity-check this path.
    out_bf16 = jax.block_until_ready(fcn_forward(x, params, use_bf16=True))
    assert out_bf16.shape == (N, out_f)
    assert bool(jnp.all(jnp.isfinite(out_bf16)))

    print("KERNEL_OK")
</pallas_src>

<mosaic_0001>
module attributes {stable_mosaic.version = 11 : i64} {
  func.func @_basic_block_kernel(%arg0: memref<32x128xf32, #tpu.memory_space<vmem>>, %arg1: memref<3x128x128xf32, #tpu.memory_space<vmem>>, %arg2: memref<3x128x128xf32, #tpu.memory_space<vmem>>, %arg3: memref<4x128xf32, #tpu.memory_space<vmem>>, %arg4: memref<128x8xf32, #tpu.memory_space<vmem>>, %arg5: memref<8x128xf32, #tpu.memory_space<vmem>>, %arg6: memref<32x128xf32, #tpu.memory_space<vmem>>) attributes {dimension_semantics = [], scalar_prefetch = 0 : i64, scratch_operands = 0 : i64, tpu.core_type = #tpu.core_type<tc>} {
    %c0 = arith.constant 0 : index
    %c0_0 = arith.constant 0 : index
    %0 = vector.load %arg0[%c0, %c0_0] : memref<32x128xf32, #tpu.memory_space<vmem>>, vector<32x128xf32>
    %1 = tpu.iota {dimensions = array<i32: 0>} : vector<32x1xi32>
    %c16_i32 = arith.constant 16 : i32
    %c0_i32 = arith.constant 0 : i32
    %2 = arith.cmpi eq, %c16_i32, %c0_i32 : i32
    %c1_i32 = arith.constant 1 : i32
    %3 = arith.select %2, %c1_i32, %c16_i32 : i32
    %4 = vector.broadcast %3 : i32 to vector<32x1xi32>
    %5 = arith.remsi %1, %4 : vector<32x1xi32>
    %c0_i32_1 = arith.constant 0 : i32
    %6 = vector.broadcast %c0_i32_1 : i32 to vector<32x1xi32>
    %7 = arith.cmpi ne, %5, %6 : vector<32x1xi32>
    %c0_i32_2 = arith.constant 0 : i32
    %8 = vector.broadcast %c0_i32_2 : i32 to vector<32x1xi32>
    %9 = arith.cmpi slt, %5, %8 : vector<32x1xi32>
    %c0_i32_3 = arith.constant 0 : i32
    %10 = arith.cmpi slt, %3, %c0_i32_3 : i32
    %11 = vector.broadcast %10 : i1 to vector<32x1xi1>
    %12 = vector.broadcast %11 : vector<32x1xi1> to vector<32x1xi1>
    %13 = arith.xori %9, %12 : vector<32x1xi1>
    %14 = arith.andi %13, %7 : vector<32x1xi1>
    %15 = vector.broadcast %3 : i32 to vector<32x1xi32>
    %16 = arith.addi %5, %15 : vector<32x1xi32>
    %17 = arith.select %14, %16, %5 : vector<32x1xi1>, vector<32x1xi32>
    %c0_i32_4 = arith.constant 0 : i32
    %18 = vector.broadcast %c0_i32_4 : i32 to vector<32x1xi32>
    %19 = arith.cmpi ne, %17, %18 : vector<32x1xi32>
    %20 = arith.extui %19 : vector<32x1xi1> to vector<32x1xi32>
    %21 = arith.sitofp %20 : vector<32x1xi32> to vector<32x1xf32>
    %c15_i32 = arith.constant 15 : i32
    %22 = vector.broadcast %c15_i32 : i32 to vector<32x1xi32>
    %23 = arith.cmpi ne, %17, %22 : vector<32x1xi32>
    %24 = arith.extui %23 : vector<32x1xi1> to vector<32x1xi32>
    %25 = arith.sitofp %24 : vector<32x1xi32> to vector<32x1xf32>
    %c0_5 = arith.constant 0 : index
    %c0_6 = arith.constant 0 : index
    %26 = vector.load %arg3[%c0_5, %c0_6] : memref<4x128xf32, #tpu.memory_space<vmem>>, vector<4x128xf32>
    %c0_7 = arith.constant 0 : index
    %c0_8 = arith.constant 0 : index
    %27 = vector.load %arg4[%c0_7, %c0_8] : memref<128x8xf32, #tpu.memory_space<vmem>>, vector<128x8xf32>
    %c0_9 = arith.constant 0 : index
    %c0_10 = arith.constant 0 : index
    %28 = vector.load %arg5[%c0_9, %c0_10] : memref<8x128xf32, #tpu.memory_space<vmem>>, vector<8x128xf32>
    %c1 = arith.constant 1 : index
    %c0_11 = arith.constant 0 : index
    %c0_12 = arith.constant 0 : index
    %29 = vector.load %arg1[%c1, %c0_11, %c0_12] : memref<3x128x128xf32, #tpu.memory_space<vmem>>, vector<1x128x128xf32>
    %30 = vector.shape_cast %29 : vector<1x128x128xf32> to vector<128x128xf32>
    %cst = arith.constant dense<0.000000e+00> : vector<32x128xf32>
    %31 = tpu.matmul %0, %30, %cst {dimension_numbers = #tpu.dot_dimension_numbers<[1], [0], [0], [1], [0, 0, 1, 1], [], []>} : vector<32x128xf32>, vector<128x128xf32>, vector<32x128xf32> -> vector<32x128xf32>
    %c1_i32_13 = arith.constant 1 : i32
    %32 = tpu.dynamic_rotate %0 by %c1_i32_13 dim 0 : vector<32x128xf32>, i32 -> vector<32x128xf32>
    %33 = vector.broadcast %21 : vector<32x1xf32> to vector<32x128xf32>
    %34 = arith.mulf %32, %33 : vector<32x128xf32>
    %c0_14 = arith.constant 0 : index
    %c0_15 = arith.constant 0 : index
    %c0_16 = arith.constant 0 : index
    %35 = vector.load %arg1[%c0_14, %c0_15, %c0_16] : memref<3x128x128xf32, #tpu.memory_space<vmem>>, vector<1x128x128xf32>
    %36 = vector.shape_cast %35 : vector<1x128x128xf32> to vector<128x128xf32>
    %cst_17 = arith.constant dense<0.000000e+00> : vector<32x128xf32>
    %37 = tpu.matmul %34, %36, %cst_17 {dimension_numbers = #tpu.dot_dimension_numbers<[1], [0], [0], [1], [0, 0, 1, 1], [], []>} : vector<32x128xf32>, vector<128x128xf32>, vector<32x128xf32> -> vector<32x128xf32>
    %38 = arith.addf %31, %37 : vector<32x128xf32>
    %c31_i32 = arith.constant 31 : i32
    %39 = tpu.dynamic_rotate %0 by %c31_i32 dim 0 : vector<32x128xf32>, i32 -> vector<32x128xf32>
    %40 = vector.broadcast %25 : vector<32x1xf32> to vector<32x128xf32>
    %41 = arith.mulf %39, %40 : vector<32x128xf32>
    %c2 = arith.constant 2 : index
    %c0_18 = arith.constant 0 : index
    %c0_19 = arith.constant 0 : index
    %42 = vector.load %arg1[%c2, %c0_18, %c0_19] : memref<3x128x128xf32, #tpu.memory_space<vmem>>, vector<1x128x128xf32>
    %43 = vector.shape_cast %42 : vector<1x128x128xf32> to vector<128x128xf32>
    %cst_20 = arith.constant dense<0.000000e+00> : vector<32x128xf32>
    %44 = tpu.matmul %41, %43, %cst_20 {dimension_numbers = #tpu.dot_dimension_numbers<[1], [0], [0], [1], [0, 0, 1, 1], [], []>} : vector<32x128xf32>, vector<128x128xf32>, vector<32x128xf32> -> vector<32x128xf32>
    %45 = arith.addf %38, %44 : vector<32x128xf32>
    %46 = vector.extract_strided_slice %26 {offsets = [0, 0], sizes = [1, 128], strides = [1, 1]} : vector<4x128xf32> to vector<1x128xf32>
    %47 = vector.extract_strided_slice %26 {offsets = [1, 0], sizes = [1, 128], strides = [1, 1]} : vector<4x128xf32> to vector<1x128xf32>
    %cst_21 = arith.constant dense<0.000000e+00> : vector<128xf32>
    %48 = vector.multi_reduction <add>, %45, %cst_21 [0] : vector<32x128xf32> to vector<128xf32>
    %49 = vector.shape_cast %48 : vector<128xf32> to vector<1x128xf32>
    %cst_22 = arith.constant dense<0.000000e+00> : vector<1x8xf32>
    %50 = tpu.matmul %49, %27, %cst_22 {dimension_numbers = #tpu.dot_dimension_numbers<[1], [0], [0], [1], [0, 0, 1, 1], [], []>} : vector<1x128xf32>, vector<128x8xf32>, vector<1x8xf32> -> vector<1x8xf32>
    %cst_23 = arith.constant 0.001953125 : f32
    %51 = vector.broadcast %cst_23 : f32 to vector<1x8xf32>
    %52 = arith.mulf %50, %51 : vector<1x8xf32>
    %cst_24 = arith.constant dense<0.000000e+00> : vector<1x128xf32>
    %53 = tpu.matmul %52, %28, %cst_24 {dimension_numbers = #tpu.dot_dimension_numbers<[1], [0], [0], [1], [0, 0, 1, 1], [], []>} : vector<1x8xf32>, vector<8x128xf32>, vector<1x128xf32> -> vector<1x128xf32>
    %54 = vector.broadcast %53 : vector<1x128xf32> to vector<32x128xf32>
    %55 = arith.subf %45, %54 : vector<32x128xf32>
    %56 = arith.mulf %55, %55 : vector<32x128xf32>
    %cst_25 = arith.constant dense<0.000000e+00> : vector<128xf32>
    %57 = vector.multi_reduction <add>, %56, %cst_25 [0] : vector<32x128xf32> to vector<128xf32>
    %58 = vector.shape_cast %57 : vector<128xf32> to vector<1x128xf32>
    %cst_26 = arith.constant dense<0.000000e+00> : vector<1x8xf32>
    %59 = tpu.matmul %58, %27, %cst_26 {dimension_numbers = #tpu.dot_dimension_numbers<[1], [0], [0], [1], [0, 0, 1, 1], [], []>} : vector<1x128xf32>, vector<128x8xf32>, vector<1x8xf32> -> vector<1x8xf32>
    %cst_27 = arith.constant 0.001953125 : f32
    %60 = vector.broadcast %cst_27 : f32 to vector<1x8xf32>
    %61 = arith.mulf %59, %60 : vector<1x8xf32>
    %cst_28 = arith.constant dense<0.000000e+00> : vector<1x128xf32>
    %62 = tpu.matmul %61, %28, %cst_28 {dimension_numbers = #tpu.dot_dimension_numbers<[1], [0], [0], [1], [0, 0, 1, 1], [], []>} : vector<1x8xf32>, vector<8x128xf32>, vector<1x128xf32> -> vector<1x128xf32>
    %cst_29 = arith.constant 9.99999974E-6 : f32
    %63 = vector.broadcast %cst_29 : f32 to vector<1x128xf32>
    %64 = arith.addf %62, %63 : vector<1x128xf32>
    %65 = math.rsqrt %64 : vector<1x128xf32>
    %66 = vector.broadcast %65 : vector<1x128xf32> to vector<32x128xf32>
    %67 = arith.mulf %55, %66 : vector<32x128xf32>
    %68 = vector.broadcast %46 : vector<1x128xf32> to vector<32x128xf32>
    %69 = arith.mulf %67, %68 : vector<32x128xf32>
    %70 = vector.broadcast %47 : vector<1x128xf32> to vector<32x128xf32>
    %71 = arith.addf %69, %70 : vector<32x128xf32>
    %cst_30 = arith.constant 0.000000e+00 : f32
    %72 = vector.broadcast %cst_30 : f32 to vector<32x128xf32>
    %73 = arith.maximumf %71, %72 : vector<32x128xf32>
    %c1_31 = arith.constant 1 : index
    %c0_32 = arith.constant 0 : index
    %c0_33 = arith.constant 0 : index
    %74 = vector.load %arg2[%c1_31, %c0_32, %c0_33] : memref<3x128x128xf32, #tpu.memory_space<vmem>>, vector<1x128x128xf32>
    %75 = vector.shape_cast %74 : vector<1x128x128xf32> to vector<128x128xf32>
    %cst_34 = arith.constant dense<0.000000e+00> : vector<32x128xf32>
    %76 = tpu.matmul %73, %75, %cst_34 {dimension_numbers = #tpu.dot_dimension_numbers<[1], [0], [0], [1], [0, 0, 1, 1], [], []>} : vector<32x128xf32>, vector<128x128xf32>, vector<32x128xf32> -> vector<32x128xf32>
    %c1_i32_35 = arith.constant 1 : i32
    %77 = tpu.dynamic_rotate %73 by %c1_i32_35 dim 0 : vector<32x128xf32>, i32 -> vector<32x128xf32>
    %78 = vector.broadcast %21 : vector<32x1xf32> to vector<32x128xf32>
    %79 = arith.mulf %77, %78 : vector<32x128xf32>
    %c0_36 = arith.constant 0 : index
    %c0_37 = arith.constant 0 : index
    %c0_38 = arith.constant 0 : index
    %80 = vector.load %arg2[%c0_36, %c0_37, %c0_38] : memref<3x128x128xf32, #tpu.memory_space<vmem>>, vector<1x128x128xf32>
    %81 = vector.shape_cast %80 : vector<1x128x128xf32> to vector<128x128xf32>
    %cst_39 = arith.constant dense<0.000000e+00> : vector<32x128xf32>
    %82 = tpu.matmul %79, %81, %cst_39 {dimension_numbers = #tpu.dot_dimension_numbers<[1], [0], [0], [1], [0, 0, 1, 1], [], []>} : vector<32x128xf32>, vector<128x128xf32>, vector<32x128xf32> -> vector<32x128xf32>
    %83 = arith.addf %76, %82 : vector<32x128xf32>
    %c31_i32_40 = arith.constant 31 : i32
    %84 = tpu.dynamic_rotate %73 by %c31_i32_40 dim 0 : vector<32x128xf32>, i32 -> vector<32x128xf32>
    %85 = vector.broadcast %25 : vector<32x1xf32> to vector<32x128xf32>
    %86 = arith.mulf %84, %85 : vector<32x128xf32>
    %c2_41 = arith.constant 2 : index
    %c0_42 = arith.constant 0 : index
    %c0_43 = arith.constant 0 : index
    %87 = vector.load %arg2[%c2_41, %c0_42, %c0_43] : memref<3x128x128xf32, #tpu.memory_space<vmem>>, vector<1x128x128xf32>
    %88 = vector.shape_cast %87 : vector<1x128x128xf32> to vector<128x128xf32>
    %cst_44 = arith.constant dense<0.000000e+00> : vector<32x128xf32>
    %89 = tpu.matmul %86, %88, %cst_44 {dimension_numbers = #tpu.dot_dimension_numbers<[1], [0], [0], [1], [0, 0, 1, 1], [], []>} : vector<32x128xf32>, vector<128x128xf32>, vector<32x128xf32> -> vector<32x128xf32>
    %90 = arith.addf %83, %89 : vector<32x128xf32>
    %91 = vector.extract_strided_slice %26 {offsets = [2, 0], sizes = [1, 128], strides = [1, 1]} : vector<4x128xf32> to vector<1x128xf32>
    %92 = vector.extract_strided_slice %26 {offsets = [3, 0], sizes = [1, 128], strides = [1, 1]} : vector<4x128xf32> to vector<1x128xf32>
    %cst_45 = arith.constant dense<0.000000e+00> : vector<128xf32>
    %93 = vector.multi_reduction <add>, %90, %cst_45 [0] : vector<32x128xf32> to vector<128xf32>
    %94 = vector.shape_cast %93 : vector<128xf32> to vector<1x128xf32>
    %cst_46 = arith.constant dense<0.000000e+00> : vector<1x8xf32>
    %95 = tpu.matmul %94, %27, %cst_46 {dimension_numbers = #tpu.dot_dimension_numbers<[1], [0], [0], [1], [0, 0, 1, 1], [], []>} : vector<1x128xf32>, vector<128x8xf32>, vector<1x8xf32> -> vector<1x8xf32>
    %cst_47 = arith.constant 0.001953125 : f32
    %96 = vector.broadcast %cst_47 : f32 to vector<1x8xf32>
    %97 = arith.mulf %95, %96 : vector<1x8xf32>
    %cst_48 = arith.constant dense<0.000000e+00> : vector<1x128xf32>
    %98 = tpu.matmul %97, %28, %cst_48 {dimension_numbers = #tpu.dot_dimension_numbers<[1], [0], [0], [1], [0, 0, 1, 1], [], []>} : vector<1x8xf32>, vector<8x128xf32>, vector<1x128xf32> -> vector<1x128xf32>
    %99 = vector.broadcast %98 : vector<1x128xf32> to vector<32x128xf32>
    %100 = arith.subf %90, %99 : vector<32x128xf32>
    %101 = arith.mulf %100, %100 : vector<32x128xf32>
    %cst_49 = arith.constant dense<0.000000e+00> : vector<128xf32>
    %102 = vector.multi_reduction <add>, %101, %cst_49 [0] : vector<32x128xf32> to vector<128xf32>
    %103 = vector.shape_cast %102 : vector<128xf32> to vector<1x128xf32>
    %cst_50 = arith.constant dense<0.000000e+00> : vector<1x8xf32>
    %104 = tpu.matmul %103, %27, %cst_50 {dimension_numbers = #tpu.dot_dimension_numbers<[1], [0], [0], [1], [0, 0, 1, 1], [], []>} : vector<1x128xf32>, vector<128x8xf32>, vector<1x8xf32> -> vector<1x8xf32>
    %cst_51 = arith.constant 0.001953125 : f32
    %105 = vector.broadcast %cst_51 : f32 to vector<1x8xf32>
    %106 = arith.mulf %104, %105 : vector<1x8xf32>
    %cst_52 = arith.constant dense<0.000000e+00> : vector<1x128xf32>
    %107 = tpu.matmul %106, %28, %cst_52 {dimension_numbers = #tpu.dot_dimension_numbers<[1], [0], [0], [1], [0, 0, 1, 1], [], []>} : vector<1x8xf32>, vector<8x128xf32>, vector<1x128xf32> -> vector<1x128xf32>
    %cst_53 = arith.constant 9.99999974E-6 : f32
    %108 = vector.broadcast %cst_53 : f32 to vector<1x128xf32>
    %109 = arith.addf %107, %108 : vector<1x128xf32>
    %110 = math.rsqrt %109 : vector<1x128xf32>
    %111 = vector.broadcast %110 : vector<1x128xf32> to vector<32x128xf32>
    %112 = arith.mulf %100, %111 : vector<32x128xf32>
    %113 = vector.broadcast %91 : vector<1x128xf32> to vector<32x128xf32>
    %114 = arith.mulf %112, %113 : vector<32x128xf32>
    %115 = vector.broadcast %92 : vector<1x128xf32> to vector<32x128xf32>
    %116 = arith.addf %114, %115 : vector<32x128xf32>
    %117 = arith.addf %116, %0 : vector<32x128xf32>
    %cst_54 = arith.constant 0.000000e+00 : f32
    %118 = vector.broadcast %cst_54 : f32 to vector<32x128xf32>
    %119 = arith.maximumf %117, %118 : vector<32x128xf32>
    %c0_55 = arith.constant 0 : index
    %c0_56 = arith.constant 0 : index
    %120 = vector.load %arg6[%c0_55, %c0_56] : memref<32x128xf32, #tpu.memory_space<vmem>>, vector<32x128xf32>
    tpu.vector_store %arg6[%c0_55, %c0_56], %119 {strides = array<i32>} : memref<32x128xf32, #tpu.memory_space<vmem>>, vector<32x128xf32>,
    return
  }
}

</mosaic_0001>

<bundles_post_ra>
// kernel: tpu_custom_call.1
= control target key start
LH: loop header
LB: loop body
LE: loop exit
PB: predicated region body
PF: predicated region fallthrough
CT: control target
= control target key end

     0   :  { %11 = vsyncpa [#allocation3], 0  ;;  %s1241_s0 = inlined_call_operand.vmem [shape: f32[32,128], index: 0, kind: input, shape index: {}]   ;;  %s1242_s1 = inlined_call_operand.hbm [shape: f32[3,128,128], index: 1, kind: input, shape index: {}]   ;;  %s1243_s2 = inlined_call_operand.hbm [shape: f32[3,128,128], index: 2, kind: input, shape index: {}]   ;;  %s1244_s3 = inlined_call_operand.vmem [shape: f32[4,128], index: 3, kind: input, shape index: {}]   ;;  %s1245_s4 = inlined_call_operand.vmem [shape: f32[128,8], index: 4, kind: input, shape index: {}]   ;;  %s1246_s5 = inlined_call_operand.vmem [shape: f32[8,128], index: 5, kind: input, shape index: {}]   ;;  %s1247_s6 = inlined_call_operand.hbm [shape: f32[32,128], index: 6, kind: output, shape index: {}]  }
   0x1   :  { %12 = vsyncpa [#allocation6], 0 }
   0x2   :  { %13 = vsyncpa [#allocation4], 0  ;;  %s20_s23 = sshll.u32 %s1242_s1, 4  ;;  %s900_s24 = smov [#allocation2]   ;;  %s21_s23 = int_to_ptr.hbm [resolvable:$true] %s20_s23 }
   0x3   :  { %s22_s25 = sshll.u32 %s900_s24, 4  ;;  %s33_s28 = sshll.u32 %s1243_s2, 4  ;;  %s23_s25 = int_to_ptr.vmem [resolvable:$true] %s22_s25  ;;  %s34_s28 = int_to_ptr.hbm [resolvable:$true] %s33_s28 }
   0x4   :  { %s901_s29 = smov 128   ;;  %s902_s30 = smov 8  }
   0x5   :  { %28 = dma.hbm_to_vmem [thread:$0]  %s21_s23, 6144, %s23_s25, [#allocation3], %s901_s29, %s901_s29, %s902_s30  }
   0x6   :  { %s903_s7 = smov [#allocation5]  }
   0x7   :  { %s35_s8 = sshll.u32 %s903_s7, 4  ;;  %s36_s8 = int_to_ptr.vmem [resolvable:$true] %s35_s8 }
   0x8   :  { %41 = dma.hbm_to_vmem [thread:$0]  %s34_s28, 6144, %s36_s8, [#allocation6], %s901_s29, %s901_s29, %s902_s30  }
   0x9   :  { %894 = dma.done.wait [#allocation3], 6144  }
   0xa   :  { %895 = vsyncadd [#allocation3], 4294961152 }
   0xb   :  { %896 = dma.done.wait [#allocation6], 6144  }
   0xc   :  { %897 = vsyncadd [#allocation6], 4294961152  ;;  %v288_v0 = vld [vmem:[#allocation2 + $0x178] sm:$0xff]  ;;  %v287_v1 = vld [vmem:[#allocation2 + $0x170] sm:$0xff]  ;;  %v60_v21 = vlaneseq  ;;  %v904_v55 = vmov 0.0   ;;  %vm352_vm6 = vcmask 64512  }
   0xd   :  { %v200_v2 = vld [vmem:[#allocation2 + $0x78] sm:$0xff]  ;;  %289 = vmatpush.msra.mxu2 %v288_v0  ;;  %v199_v4 = vld [vmem:[#allocation2 + $0x70] sm:$0xff]  ;;  %v286_v5 = vld [vmem:[#allocation2 + $0x168] sm:$0xff]  ;;  %s790_s26 = sshll.u32 %s1247_s6, 4  ;;  %s791_s26 = int_to_ptr.hbm [resolvable:$true] %s790_s26 }
   0xe   :  { %201 = vmatpush.msra.mxu0 %v200_v2  ;;  %v171_v3 = vld [vmem:[#allocation2 + $0xf8] sm:$0xff]  ;;  %v170_v6 = vld [vmem:[#allocation2 + $0xf0] sm:$0xff]  ;;  %v198_v7 = vld [vmem:[#allocation2 + $0x68] sm:$0xff]  ;;  %v953_v28 = vshrl.u32 %v60_v21, 7 }
   0xf   :  { %230 = vmatpush.msra.mxu1 %v171_v3  ;;  %290 = vmatpush.msra.mxu2 %v287_v1  ;;  %v169_v8 = vld [vmem:[#allocation2 + $0xe8] sm:$0xff]  ;;  %v285_v9 = vld [vmem:[#allocation2 + $0x160] sm:$0xff]  ;;  %v284_v12 = vld [vmem:[#allocation2 + $0x158] sm:$0xff] }
  0x10   :  { %202 = vmatpush.msra.mxu0 %v199_v4  ;;  %v197_v10 = vld [vmem:[#allocation2 + $0x60] sm:$0xff]  ;;  %v196_v13 = vld [vmem:[#allocation2 + $0x58] sm:$0xff]  ;;  %v283_v15 = vld [vmem:[#allocation2 + $0x150] sm:$0xff]  ;;  %v69_v36 = vand.u32 15, %v953_v28  ;;  %v62_v46 = vadd.s32 8, %v953_v28  ;;  %vm176_vm1 = vcmp.lt.s32.totalorder %v953_v28, 1 }
  0x11   :  { %231 = vmatpush.msra.mxu1 %v170_v6  ;;  %291 = vmatpush.msra.mxu2 %v286_v5  ;;  %v168_v11 = vld [vmem:[#allocation2 + $0xe0] sm:$0xff]  ;;  %v167_v14 = vld [vmem:[#allocation2 + $0xd8] sm:$0xff]  ;;  %v195_v16 = vld [vmem:[#allocation2 + $0x50] sm:$0xff]  ;;  %vm263_vm2 = vcmp.lt.s32.totalorder %v953_v28, 7  ;;  %v63_v3 = vadd.s32 16, %v953_v28 }
  0x12   :  { %203 = vmatpush.msra.mxu0 %v198_v7  ;;  %v166_v17 = vld [vmem:[#allocation2 + $0xd0] sm:$0xff]  ;;  %v282_v18 = vld [vmem:[#allocation2 + $0x148] sm:$0xff]  ;;  %v281_v22 = vld [vmem:[#allocation2 + $0x140] sm:$0xff]  ;;  %vm113_vm0 = vcmp.ne.s32.totalorder %v69_v36, 0  ;;  %v76_v59 = vand.u32 15, %v62_v46 }
  0x13   :  { %232 = vmatpush.msra.mxu1 %v169_v8  ;;  %292 = vmatpush.msra.mxu2 %v285_v9  ;;  %v194_v19 = vld [vmem:[#allocation2 + $0x48] sm:$0xff]  ;;  %v193_v23 = vld [vmem:[#allocation2 + $0x40] sm:$0xff]  ;;  %v280_v25 = vld [vmem:[#allocation2 + $0x138] sm:$0xff]  ;;  %v978_v56 = vsel %vm113_vm0, 1.0, %v904_v55  ;;  %v83_v7 = vand.u32 15, %v63_v3 }
  0x14   :  { %204 = vmatpush.msra.mxu0 %v197_v10  ;;  %v165_v20 = vld [vmem:[#allocation2 + $0xc8] sm:$0xff]  ;;  %v164_v24 = vld [vmem:[#allocation2 + $0xc0] sm:$0xff]  ;;  %v192_v26 = vld [vmem:[#allocation2 + $0x38] sm:$0xff]  ;;  %vm126_vm3 = vcmp.ne.s32.totalorder %v76_v59, 15 }
  0x15   :  { %233 = vmatpush.msra.mxu1 %v168_v11  ;;  %293 = vmatpush.msra.mxu2 %v284_v12  ;;  %v163_v27 = vld [vmem:[#allocation2 + $0xb8] sm:$0xff]  ;;  %v279_v29 = vld [vmem:[#allocation2 + $0x130] sm:$0xff]  ;;  %v278_v32 = vld [vmem:[#allocation2 + $0x128] sm:$0xff]  ;;  %v995_v4 = vsel %vm126_vm3, 1.0, %v904_v55  ;;  %v64_v11 = vadd.s32 24, %v953_v28  ;;  %vm115_vm4 = vcmp.ne.s32.totalorder %v83_v7, 0 }
  0x16   :  { %205 = vmatpush.msra.mxu0 %v196_v13  ;;  %v191_v30 = vld [vmem:[#allocation2 + $0x30] sm:$0xff]  ;;  %v190_v33 = vld [vmem:[#allocation2 + $0x28] sm:$0xff]  ;;  %v958_v35 = vld [vmem:[%s1241_s0 + $0x18] sm:$0xff]  ;;  %v1007_v13 = vsel %vm115_vm4, 1.0, %v904_v55 }
  0x17   :  { %234 = vmatpush.msra.mxu1 %v167_v14  ;;  %294 = vmatpush.msra.mxu2 %v283_v15  ;;  %v162_v31 = vld [vmem:[#allocation2 + $0xb0] sm:$0xff]  ;;  %v161_v34 = vld [vmem:[#allocation2 + $0xa8] sm:$0xff]  ;;  %v277_v37 = vld [vmem:[#allocation2 + $0x120] sm:$0xff]  ;;  %v175_v45 = vrot.slane %v958_v35, 7  ;;  %v262_v12 = vrot.slane %v958_v35, 1  ;;  %v90_v15 = vand.u32 15, %v64_v11 }
  0x18   :  { %206 = vmatpush.msra.mxu0 %v195_v16  ;;  %v189_v38 = vld [vmem:[#allocation2 + $0x20] sm:$0xff]  ;;  %v276_v41 = vld [vmem:[#allocation2 + $0x118] sm:$0xff]  ;;  %v969_v43 = vld [vmem:[%s1241_s0 + $0x8] sm:$0xff] }
  0x19   :  { %235 = vmatpush.msra.mxu1 %v166_v17  ;;  %295 = vmatpush.msra.mxu2 %v282_v18  ;;  %v160_v39 = vld [vmem:[#allocation2 + $0xa0] sm:$0xff]  ;;  %v188_v42 = vld [vmem:[#allocation2 + $0x18] sm:$0xff]  ;;  %v275_v48 = vld [vmem:[#allocation2 + $0x110] sm:$0xff]  ;;  %v260_v52 = vrot.slane %v969_v43, 1  ;;  %v173_v6 = vrot.slane %v969_v43, 7  ;;  %vm128_vm5 = vcmp.ne.s32.totalorder %v90_v15, 15 }
  0x1a   :  { %207 = vmatpush.msra.mxu0 %v194_v19  ;;  %v964_v40 = vld [vmem:[%s1241_s0] sm:$0xff]  ;;  %v159_v47 = vld [vmem:[#allocation2 + $0x98] sm:$0xff]  ;;  %v187_v49 = vld [vmem:[#allocation2 + $0x10] sm:$0xff]  ;;  %v1015_v18 = vsel %vm128_vm5, 1.0, %v904_v55 }
  0x1b   :  { %236 = vmatpush.msra.mxu1 %v165_v20  ;;  %296 = vmatpush.msra.mxu2 %v281_v22  ;;  %v172_v44 = vrot.slane %v964_v40, 7  ;;  %v158_v50 = vld [vmem:[#allocation2 + $0x90] sm:$0xff]  ;;  %v259_v51 = vrot.slane %v964_v40, 1  ;;  %v274_v53 = vld [vmem:[#allocation2 + $0x108] sm:$0xff]  ;;  %v273_v61 = vld [vmem:[#allocation2 + $0x100] sm:$0xff] }
  0x1c   :  { %208 = vmatpush.msra.mxu0 %v193_v23  ;;  %v186_v54 = vld [vmem:[#allocation2 + $0x8] sm:$0xff]  ;;  %v987_v58 = vld [vmem:[%s1241_s0 + $0x10] sm:$0xff]  ;;  %v185_v62 = vld [vmem:[#allocation2] sm:$0xff] }
  0x1d   :  { %237 = vmatpush.msra.mxu1 %v164_v24  ;;  %297 = vmatpush.msra.mxu2 %v280_v25  ;;  %v180_v57 = vsel %vm176_vm1, %v175_v45, %v172_v44  ;;  %v157_v60 = vld [vmem:[#allocation2 + $0x88] sm:$0xff]  ;;  %v266_v63 = vsel %vm263_vm2, %v259_v51, %v260_v52  ;;  %v156_v0 = vld [vmem:[#allocation2 + $0x80] sm:$0xff]  ;;  %v261_v2 = vrot.slane %v987_v58, 1  ;;  %v179_v9 = vsel %vm176_vm1, %v172_v44, %v173_v6  ;;  %v1028_v22 = vld [vmem:[%s1245_s4 + $0x78] sm:$0xff] }
  0x1e   :  { %209 = vmatpush.msra.mxu0 %v192_v26  ;;  %v181_v1 = vmul.f32 %v978_v56, %v180_v57  ;;  %v174_v10 = vrot.slane %v987_v58, 7  ;;  %v267_v19 = vsel %vm263_vm2, %v262_v12, %v259_v51  ;;  %331 = vmatpush.msra.mxu3 %v1028_v22  ;;  %v1035_v23 = vld [vmem:[%s1245_s4 + $0x70] sm:$0xff]  ;;  %v1041_v24 = vld [vmem:[%s1245_s4 + $0x68] sm:$0xff]  ;;  %v1049_v25 = vld [vmem:[%s1245_s4 + $0x60] sm:$0xff] }
  0x1f   :  { %238 = vmatpush.msra.mxu1 %v163_v27  ;;  %298 = vmatpush.msra.mxu2 %v279_v29  ;;  %v265_v5 = vsel %vm263_vm2, %v260_v52, %v261_v2  ;;  %v264_v16 = vsel %vm263_vm2, %v261_v2, %v262_v12  ;;  %v271_v20 = vmul.f32 %v1015_v18, %v267_v19  ;;  %v1056_v26 = vld [vmem:[%s1245_s4 + $0x58] sm:$0xff]  ;;  %v1063_v27 = vld [vmem:[%s1245_s4 + $0x50] sm:$0xff]  ;;  %v1069_v29 = vld [vmem:[%s1245_s4 + $0x48] sm:$0xff] }
  0x20   :  { %210 = vmatpush.msra.mxu0 %v191_v30  ;;  %v269_v8 = vmul.f32 %v995_v4, %v265_v5  ;;  %v178_v14 = vsel %vm176_vm1, %v173_v6, %v174_v10  ;;  %v177_v21 = vsel %vm176_vm1, %v174_v10, %v175_v45  ;;  %332 = vmatpush.msra.mxu3 %v1035_v23  ;;  %v1077_v30 = vld [vmem:[%s1245_s4 + $0x40] sm:$0xff]  ;;  %v1098_v36 = vld [vmem:[%s1245_s4 + $0x28] sm:$0xff] }
  0x21   :  { %239 = vmatpush.msra.mxu1 %v162_v31  ;;  %299 = vmatpush.msra.mxu2 %v278_v32  ;;  %v183_v17 = vmul.f32 %v1007_v13, %v178_v14  ;;  %v1084_v31 = vld [vmem:[%s1245_s4 + $0x38] sm:$0xff]  ;;  %v1124_v45 = vld [vmem:[%s1245_s4 + $0x8] sm:$0xff]  ;;  %v1131_v46 = vld [vmem:[%s1245_s4] sm:$0xff] }
  0x22   :  { %211 = vmatpush.msra.mxu0 %v190_v33  ;;  %333 = vmatpush.msra.mxu3 %v1041_v24 }
  0x23   :  { %240 = vmatpush.msra.mxu1 %v161_v34  ;;  %300 = vmatpush.msra.mxu2 %v277_v37  ;;  %v1091_v34 = vld [vmem:[%s1245_s4 + $0x30] sm:$0xff]  ;;  %v1105_v37 = vld [vmem:[%s1245_s4 + $0x20] sm:$0xff] }
  0x24   :  { %212 = vmatpush.msra.mxu0 %v189_v38  ;;  %334 = vmatpush.msra.mxu3 %v1049_v25  ;;  %v1110_v38 = vld [vmem:[%s1245_s4 + $0x18] sm:$0xff] }
  0x25   :  { %241 = vmatpush.msra.mxu1 %v160_v39  ;;  %301 = vmatpush.msra.mxu2 %v276_v41  ;;  %v1117_v41 = vld [vmem:[%s1245_s4 + $0x10] sm:$0xff] }
  0x26   :  { %213 = vmatpush.msra.mxu0 %v188_v42  ;;  %335 = vmatpush.msra.mxu3 %v1056_v26 }
  0x27   :  { %242 = vmatpush.msra.mxu1 %v159_v47  ;;  %302 = vmatpush.msra.mxu2 %v275_v48  ;;  %v1140_v48 = vld [vmem:[%s1246_s5] sm:$0xff] }
  0x28   :  { %214 = vmatpush.msra.mxu0 %v187_v49  ;;  %336 = vmatpush.msra.mxu3 %v1063_v27 }
  0x29   :  { %243 = vmatpush.msra.mxu1 %v158_v50  ;;  %303 = vmatpush.msra.mxu2 %v274_v53 }
  0x2a   :  { %215 = vmatpush.msra.mxu0 %v186_v54  ;;  %337 = vmatpush.msra.mxu3 %v1069_v29 }
  0x2b   :  { %244 = vmatpush.msra.mxu1 %v157_v60  ;;  %304 = vmatpush.msra.mxu2 %v273_v61 }
  0x2c   :  { %216 = vmatpush.msra.mxu0 %v185_v62  ;;  %305 = vmatmul.f32.vlgmr.msra.gmra.mxu2 %v266_v63 }
  0x2d   :  { %245 = vmatpush.msra.mxu1 %v156_v0  ;;  %217 = vmatmul.f32.vlgmr.msra.gmra.mxu0 %v181_v1 }
  0x2e   :  { %246 = vmatmul.f32.vlgmr.msra.gmra.mxu1 %v964_v40  ;;  %394 = vmatpush.msrb.mxu0 %v1028_v22 }
  0x2f   :  { %338 = vmatpush.msra.mxu3 %v1077_v30 }
  0x30   :  { %395 = vmatpush.msrb.mxu0 %v1035_v23 }
  0x31   :  { %339 = vmatpush.msra.mxu3 %v1084_v31 }
  0x32   :  { %396 = vmatpush.msrb.mxu0 %v1041_v24 }
  0x33   :  { %340 = vmatpush.msra.mxu3 %v1091_v34 }
  0x34   :  { %308 = vmatmul.f32.gmra.mxu2 %v269_v8  ;;  %397 = vmatpush.msrb.mxu0 %v1049_v25 }
  0x35   :  { %220 = vmatmul.f32.gmra.mxu0 %v179_v9  ;;  %341 = vmatpush.msra.mxu3 %v1098_v36 }
  0x36   :  { %249 = vmatmul.f32.gmra.mxu1 %v969_v43  ;;  %398 = vmatpush.msrb.mxu0 %v1056_v26 }
  0x37   :  { %342 = vmatpush.msra.mxu3 %v1105_v37 }
  0x38   :  { %399 = vmatpush.msrb.mxu0 %v1063_v27 }
  0x39   :  { %343 = vmatpush.msra.mxu3 %v1110_v38 }
  0x3a   :  { %400 = vmatpush.msrb.mxu0 %v1069_v29 }
  0x3b   :  { %344 = vmatpush.msra.mxu3 %v1117_v41 }
  0x3c   :  { %311 = vmatmul.f32.gmra.mxu2 %v264_v16  ;;  %401 = vmatpush.msrb.mxu0 %v1077_v30 }
  0x3d   :  { %223 = vmatmul.f32.gmra.mxu0 %v183_v17  ;;  %345 = vmatpush.msra.mxu3 %v1124_v45 }
  0x3e   :  { %252 = vmatmul.f32.gmra.mxu1 %v987_v58  ;;  %402 = vmatpush.msrb.mxu0 %v1084_v31 }
  0x3f   :  { %346 = vmatpush.msra.mxu3 %v1131_v46 }
  0x40   :  { %403 = vmatpush.msrb.mxu0 %v1091_v34 }
  0x41   :  { %371 = vmatpush.msrb.mxu3 %v1140_v48 }
  0x42   :  { %404 = vmatpush.msrb.mxu0 %v1098_v36 }
  0x44   :  { %314 = vmatmul.f32.gmra.mxu2 %v271_v20  ;;  %405 = vmatpush.msrb.mxu0 %v1105_v37 }
  0x45   :  { %226 = vmatmul.f32.gmra.mxu0 %v177_v21 }
  0x46   :  { %255 = vmatmul.f32.gmra.mxu1 %v958_v35  ;;  %406 = vmatpush.msrb.mxu0 %v1110_v38 }
  0x48   :  { %407 = vmatpush.msrb.mxu0 %v1117_v41 }
  0x4a   :  { %408 = vmatpush.msrb.mxu0 %v1124_v45 }
  0x4c   :  { %409 = vmatpush.msrb.mxu0 %v1131_v46 }
  0x4e   :  { %641 = vmatpush.msra.mxu0 %v1028_v22 }
  0x50   :  { %642 = vmatpush.msra.mxu0 %v1035_v23 }
  0x52   :  { %643 = vmatpush.msra.mxu0 %v1041_v24 }
  0x54   :  { %644 = vmatpush.msra.mxu0 %v1049_v25 }
  0x56   :  { %645 = vmatpush.msra.mxu0 %v1056_v26 }
  0x58   :  { %646 = vmatpush.msra.mxu0 %v1063_v27 }
  0x5a   :  { %647 = vmatpush.msra.mxu0 %v1069_v29 }
  0x5c   :  { %648 = vmatpush.msra.mxu0 %v1077_v30 }
  0x5e   :  { %649 = vmatpush.msra.mxu0 %v1084_v31 }
  0x60   :  { %650 = vmatpush.msra.mxu0 %v1091_v34 }
  0x62   :  { %651 = vmatpush.msra.mxu0 %v1098_v36 }
  0x64   :  { %652 = vmatpush.msra.mxu0 %v1105_v37 }
  0x66   :  { %653 = vmatpush.msra.mxu0 %v1110_v38 }
  0x68   :  { %654 = vmatpush.msra.mxu0 %v1117_v41 }
  0x6a   :  { %655 = vmatpush.msra.mxu0 %v1124_v45 }
  0x6c   :  { %656 = vmatpush.msra.mxu0 %v1131_v46 }
  0xaa   :  { %v218_v32 = vpop.f32.mrf.mxu0 }
  0xab   :  { %v247_v33 = vpop.f32.mrf.mxu1 }
  0xac   :  { %v248_v53 = vadd.f32 %v247_v33, %v218_v32 }
  0xaf   :  { %v306_v39 = vpop.f32.mrf.mxu2 }
  0xb0   :  { %v318_v60 = vadd.f32 %v306_v39, %v248_v53 }
  0xb2   :  { %v221_v42 = vpop.f32.mrf.mxu0 }
  0xb3   :  { %v250_v44 = vpop.f32.mrf.mxu1 }
  0xb4   :  { %v251_v51 = vadd.f32 %v250_v44, %v221_v42 }
  0xb7   :  { %v309_v47 = vpop.f32.mrf.mxu2 }
  0xb8   :  { %v319_v55 = vadd.f32 %v309_v47, %v251_v51 }
  0xba   :  { %v224_v49 = vpop.f32.mrf.mxu0  ;;  %v322_v63 = vadd.f32 %v319_v55, %v318_v60 }
  0xbb   :  { %v253_v50 = vpop.f32.mrf.mxu1 }
  0xbc   :  { %v254_v54 = vadd.f32 %v253_v50, %v224_v49 }
  0xbf   :  { %v312_v52 = vpop.f32.mrf.mxu2 }
  0xc0   :  { %v320_v61 = vadd.f32 %v312_v52, %v254_v54 }
  0xc2   :  { %v227_v57 = vpop.f32.mrf.mxu0  ;;  %v323_v1 = vadd.f32 %v322_v63, %v320_v61  ;;  %v511_v63 = vld [vmem:[#allocation5 + $0x78] sm:$0xff] }
  0xc3   :  { %v256_v59 = vpop.f32.mrf.mxu1  ;;  %512 = vmatpush.msrb.mxu1 %v511_v63  ;;  %v586_v63 = vld [vmem:[#allocation5 + $0x118] sm:$0xff] }
  0xc4   :  { %v257_v62 = vadd.f32 %v256_v59, %v227_v57  ;;  %v483_v59 = vld [vmem:[#allocation5 + $0xf8] sm:$0xff] }
  0xc5   :  { %541 = vmatpush.msrb.mxu2 %v483_v59  ;;  %v501_v59 = vld [vmem:[#allocation5 + $0x28] sm:$0xff] }
  0xc7   :  { %v315_v0 = vpop.f32.mrf.mxu2 }
  0xc8   :  { %v321_v2 = vadd.f32 %v315_v0, %v257_v62  ;;  %v481_v62 = vld [vmem:[#allocation5 + $0xe8] sm:$0xff]  ;;  %v597_v0 = vld [vmem:[#allocation5 + $0x170] sm:$0xff] }
  0xca   :  { %v324_v3 = vadd.f32 %v323_v1, %v321_v2  ;;  %v480_v1 = vld [vmem:[#allocation5 + $0xe0] sm:$0xff] }
  0xcc   :  { %v325_v5 = vrot.slane %v324_v3, 4 }
  0xce   :  { %v326_v6 = vadd.f32 %v325_v5, %v324_v3  ;;  %v596_v3 = vld [vmem:[#allocation5 + $0x168] sm:$0xff]  ;;  %v479_v5 = vld [vmem:[#allocation5 + $0xd8] sm:$0xff] }
  0xd0   :  { %v327_v7 = vrot.slane %v326_v6, 2 }
  0xd2   :  { %v328_v8 = vadd.f32 %v327_v7, %v326_v6  ;;  %v509_v6 = vld [vmem:[#allocation5 + $0x68] sm:$0xff]  ;;  %v595_v7 = vld [vmem:[#allocation5 + $0x160] sm:$0xff] }
  0xd4   :  { %v329_v9 = vrot.slane %v328_v8, 1 }
  0xd6   :  { %v330_v10 = vadd.f32 %v329_v9, %v328_v8  ;;  %v478_v8 = vld [vmem:[#allocation5 + $0xd0] sm:$0xff]  ;;  %v508_v9 = vld [vmem:[#allocation5 + $0x60] sm:$0xff] }
  0xd8   :  { %347 = vmatmul.f32.vlgmr.msra.gmra.mxu3 %v330_v10  ;;  %v594_v10 = vld [vmem:[#allocation5 + $0x158] sm:$0xff] }
  0xd9   :  { %433 = vmatpush.msra.mxu3 %v1140_v48 }
 0x15b   :  { %v348_v11 = vpop.f32.mrf.mxu3 }
 0x15c   :  { %v351_v12 = vmul.f32 0.001953125, %v348_v11  ;;  %v477_v11 = vld [vmem:[#allocation5 + $0xc8] sm:$0xff] }
 0x15e   :  { %808 = vmatmul.msk.f32.vlgmr.msrb.gmra.mxu3 %vm352_vm6, %v351_v12  ;;  %v507_v12 = vld [vmem:[#allocation5 + $0x58] sm:$0xff] }
 0x1e1   :  { %v373_v14 = vpop.f32.mrf.mxu3 }
 0x1e2   :  { %v376_v15 = vperm.slane %v373_v14, 0  ;;  %v593_v14 = vld [vmem:[#allocation5 + $0x150] sm:$0xff] }
 0x1e4   :  { %v1161_v16 = vsub.f32 %v318_v60, %v376_v15  ;;  %v1163_v17 = vsub.f32 %v319_v55, %v376_v15  ;;  %v1165_v19 = vsub.f32 %v320_v61, %v376_v15  ;;  %v1167_v20 = vsub.f32 %v321_v2, %v376_v15  ;;  %v482_v60 = vld [vmem:[#allocation5 + $0xf0] sm:$0xff]  ;;  %v598_v61 = vld [vmem:[#allocation5 + $0x178] sm:$0xff]  ;;  %v476_v15 = vld [vmem:[#allocation5 + $0xc0] sm:$0xff] }
 0x1e5   :  { %542 = vmatpush.msrb.mxu2 %v482_v60  ;;  %599 = vmatpush.msrb.mxu3 %v598_v61  ;;  %v510_v2 = vld [vmem:[#allocation5 + $0x70] sm:$0xff]  ;;  %v587_v60 = vld [vmem:[#allocation5 + $0x120] sm:$0xff] }
 0x1e6   :  { %v381_v21 = vmul.f32 %v1161_v16, %v1161_v16  ;;  %v382_v32 = vmul.f32 %v1163_v17, %v1163_v17  ;;  %v383_v33 = vmul.f32 %v1165_v19, %v1165_v19  ;;  %v384_v42 = vmul.f32 %v1167_v20, %v1167_v20  ;;  %513 = vmatpush.msrb.mxu1 %v510_v2  ;;  %v470_v61 = vld [vmem:[#allocation5 + $0x90] sm:$0xff] }
 0x1e7   :  { %543 = vmatpush.msrb.mxu2 %v481_v62  ;;  %600 = vmatpush.msrb.mxu3 %v597_v0  ;;  %v500_v62 = vld [vmem:[#allocation5 + $0x20] sm:$0xff]  ;;  %v469_v0 = vld [vmem:[#allocation5 + $0x88] sm:$0xff]  ;;  %v585_v2 = vld [vmem:[#allocation5 + $0x110] sm:$0xff] }
 0x1e8   :  { %v385_v39 = vadd.f32 %v382_v32, %v381_v21  ;;  %514 = vmatpush.msrb.mxu1 %v509_v6  ;;  %v506_v21 = vld [vmem:[#allocation5 + $0x50] sm:$0xff]  ;;  %v592_v32 = vld [vmem:[#allocation5 + $0x148] sm:$0xff] }
 0x1e9   :  { %544 = vmatpush.msrb.mxu2 %v480_v1  ;;  %601 = vmatpush.msrb.mxu3 %v596_v3  ;;  %v499_v1 = vld [vmem:[#allocation5 + $0x18] sm:$0xff]  ;;  %v468_v3 = vld [vmem:[#allocation5 + $0x80] sm:$0xff]  ;;  %v584_v6 = vld [vmem:[#allocation5 + $0x108] sm:$0xff] }
 0x1ea   :  { %v386_v44 = vadd.f32 %v385_v39, %v383_v33  ;;  %515 = vmatpush.msrb.mxu1 %v508_v9  ;;  %v475_v33 = vld [vmem:[#allocation5 + $0xb8] sm:$0xff]  ;;  %v505_v39 = vld [vmem:[#allocation5 + $0x48] sm:$0xff] }
 0x1eb   :  { %545 = vmatpush.msrb.mxu2 %v479_v5  ;;  %602 = vmatpush.msrb.mxu3 %v595_v7  ;;  %v498_v5 = vld [vmem:[#allocation5 + $0x10] sm:$0xff]  ;;  %v497_v7 = vld [vmem:[#allocation5 + $0x8] sm:$0xff] }
 0x1ec   :  { %v387_v47 = vadd.f32 %v386_v44, %v384_v42  ;;  %516 = vmatpush.msrb.mxu1 %v507_v12  ;;  %v591_v42 = vld [vmem:[#allocation5 + $0x140] sm:$0xff]  ;;  %v474_v44 = vld [vmem:[#allocation5 + $0xb0] sm:$0xff] }
 0x1ed   :  { %546 = vmatpush.msrb.mxu2 %v478_v8  ;;  %603 = vmatpush.msrb.mxu3 %v594_v10  ;;  %v583_v8 = vld [vmem:[#allocation5 + $0x100] sm:$0xff] }
 0x1ee   :  { %v388_v49 = vrot.slane %v387_v47, 4  ;;  %517 = vmatpush.msrb.mxu1 %v506_v21 }
 0x1ef   :  { %547 = vmatpush.msrb.mxu2 %v477_v11  ;;  %604 = vmatpush.msrb.mxu3 %v593_v14  ;;  %v496_v11 = vld [vmem:[#allocation5] sm:$0xff] }
 0x1f0   :  { %v389_v50 = vadd.f32 %v388_v49, %v387_v47  ;;  %518 = vmatpush.msrb.mxu1 %v505_v39  ;;  %v504_v47 = vld [vmem:[#allocation5 + $0x40] sm:$0xff]  ;;  %v590_v49 = vld [vmem:[#allocation5 + $0x138] sm:$0xff] }
 0x1f1   :  { %548 = vmatpush.msrb.mxu2 %v476_v15  ;;  %605 = vmatpush.msrb.mxu3 %v592_v32 }
 0x1f2   :  { %v390_v51 = vrot.slane %v389_v50, 2  ;;  %519 = vmatpush.msrb.mxu1 %v504_v47 }
 0x1f3   :  { %549 = vmatpush.msrb.mxu2 %v475_v33  ;;  %606 = vmatpush.msrb.mxu3 %v591_v42 }
 0x1f4   :  { %v391_v52 = vadd.f32 %v390_v51, %v389_v50  ;;  %v473_v50 = vld [vmem:[#allocation5 + $0xa8] sm:$0xff]  ;;  %v503_v51 = vld [vmem:[#allocation5 + $0x38] sm:$0xff] }
 0x1f5   :  { %550 = vmatpush.msrb.mxu2 %v474_v44  ;;  %607 = vmatpush.msrb.mxu3 %v590_v49 }
 0x1f6   :  { %v392_v53 = vrot.slane %v391_v52, 1  ;;  %520 = vmatpush.msrb.mxu1 %v503_v51 }
 0x1f7   :  { %551 = vmatpush.msrb.mxu2 %v473_v50 }
 0x1f8   :  { %v393_v54 = vadd.f32 %v392_v53, %v391_v52  ;;  %v589_v52 = vld [vmem:[#allocation5 + $0x130] sm:$0xff]  ;;  %v472_v53 = vld [vmem:[#allocation5 + $0xa0] sm:$0xff] }
 0x1f9   :  { %608 = vmatpush.msrb.mxu3 %v589_v52  ;;  %552 = vmatpush.msrb.mxu2 %v472_v53 }
 0x1fa   :  { %410 = vmatmul.f32.vlgmr.msrb.gmra.mxu0 %v393_v54  ;;  %v502_v54 = vld [vmem:[#allocation5 + $0x30] sm:$0xff] }
 0x1fb   :  { %742 = vmatpush.msrb.mxu0 %v1140_v48  ;;  %521 = vmatpush.msrb.mxu1 %v502_v54 }
 0x1fd   :  { %522 = vmatpush.msrb.mxu1 %v501_v59 }
 0x1ff   :  { %523 = vmatpush.msrb.mxu1 %v500_v62 }
 0x201   :  { %524 = vmatpush.msrb.mxu1 %v499_v1 }
 0x203   :  { %525 = vmatpush.msrb.mxu1 %v498_v5 }
 0x205   :  { %526 = vmatpush.msrb.mxu1 %v497_v7 }
 0x207   :  { %527 = vmatpush.msrb.mxu1 %v496_v11 }
 0x209   :  { %680 = vmatpush.msra.mxu1 %v1140_v48 }
 0x277   :  { %v411_v55 = vpop.f32.mrf.mxu0 }
 0x278   :  { %v414_v57 = vmul.f32 0.001953125, %v411_v55  ;;  %v588_v55 = vld [vmem:[#allocation5 + $0x128] sm:$0xff] }
 0x279   :  { %609 = vmatpush.msrb.mxu3 %v588_v55 }
 0x27a   :  { %809 = vmatmul.msk.f32.vlgmr.msra.gmra.mxu3 %vm352_vm6, %v414_v57  ;;  %v471_v57 = vld [vmem:[#allocation5 + $0x98] sm:$0xff] }
 0x27b   :  { %553 = vmatpush.msrb.mxu2 %v471_v57  ;;  %610 = vmatpush.msrb.mxu3 %v587_v60 }
 0x27d   :  { %554 = vmatpush.msrb.mxu2 %v470_v61  ;;  %611 = vmatpush.msrb.mxu3 %v586_v63 }
 0x27f   :  { %555 = vmatpush.msrb.mxu2 %v469_v0  ;;  %612 = vmatpush.msrb.mxu3 %v585_v2 }
 0x281   :  { %556 = vmatpush.msrb.mxu2 %v468_v3  ;;  %613 = vmatpush.msrb.mxu3 %v584_v6 }
 0x283   :  { %703 = vmatpush.msra.mxu2 %v1028_v22  ;;  %614 = vmatpush.msrb.mxu3 %v583_v8 }
 0x285   :  { %704 = vmatpush.msra.mxu2 %v1035_v23 }
 0x287   :  { %705 = vmatpush.msra.mxu2 %v1041_v24  ;;  %v1192_v24 = vld [vmem:[%s1244_s3] sm:$0xf]  ;;  %s905_s3 = smov [#allocation7]  }
 0x288   :  { %s788_s23 = sshll.u32 %s905_s3, 4  ;;  %s789_s23 = int_to_ptr.vmem [resolvable:$true] %s788_s23 }
 0x289   :  { %706 = vmatpush.msra.mxu2 %v1049_v25 }
 0x28b   :  { %707 = vmatpush.msra.mxu2 %v1056_v26 }
 0x28d   :  { %708 = vmatpush.msra.mxu2 %v1063_v27  ;;  %v453_v27 = vperm.slane %v1192_v24, 0 }
 0x28f   :  { %709 = vmatpush.msra.mxu2 %v1069_v29  ;;  %v458_v29 = vperm.slane %v1192_v24, 1 }
 0x291   :  { %710 = vmatpush.msra.mxu2 %v1077_v30 }
 0x293   :  { %711 = vmatpush.msra.mxu2 %v1084_v31 }
 0x295   :  { %712 = vmatpush.msra.mxu2 %v1091_v34 }
 0x297   :  { %713 = vmatpush.msra.mxu2 %v1098_v36 }
 0x299   :  { %714 = vmatpush.msra.mxu2 %v1105_v37 }
 0x29b   :  { %715 = vmatpush.msra.mxu2 %v1110_v38 }
 0x29d   :  { %716 = vmatpush.msra.mxu2 %v1117_v41 }
 0x29f   :  { %717 = vmatpush.msra.mxu2 %v1124_v45 }
 0x2a1   :  { %718 = vmatpush.msra.mxu2 %v1131_v46 }
 0x2fd   :  { %v435_v9 = vpop.f32.mrf.mxu3 }
 0x2fe   :  { %v436_v10 = vadd.f32 1e-05, %v435_v9 }
 0x300   :  { %818 = vrsqrt.f32 %v436_v10  ;;  %vm444_vm8 = vweird.f32 %v436_v10 }
 0x306   :  { %v819_v12 = vpop.eup %818 }
 0x307   :  { %v439_v14 = vmul.f32 %v819_v12, %v436_v10  ;;  %vm445_vm7 = vweird.f32 %v819_v12 }
 0x308   :  { %vm446_vm9 = vmor %vm444_vm8, %vm445_vm7 }
 0x309   :  { %v440_v22 = vmul.f32 %v819_v12, %v439_v14 }
 0x30b   :  { %v441_v15 = vmul.f32 0.5, %v440_v22 }
 0x30d   :  { %v442_v23 = vsub.f32 1.5, %v441_v15 }
 0x30f   :  { %v443_v48 = vmul.f32 %v819_v12, %v442_v23 }
 0x311   :  { %v447_v25 = vsel %vm446_vm9, %v819_v12, %v443_v48 }
 0x312   :  { %v448_v26 = vperm.slane %v447_v25, 0 }
 0x314   :  { %v450_v30 = vmul.f32 %v448_v26, %v1163_v17  ;;  %v452_v31 = vmul.f32 %v448_v26, %v1167_v20  ;;  %v449_v21 = vmul.f32 %v448_v26, %v1161_v16  ;;  %v451_v32 = vmul.f32 %v448_v26, %v1165_v19 }
 0x316   :  { %v454_v34 = vmul.f32 %v453_v27, %v449_v21  ;;  %v455_v33 = vmul.f32 %v453_v27, %v450_v30  ;;  %v457_v36 = vmul.f32 %v453_v27, %v452_v31  ;;  %v456_v39 = vmul.f32 %v453_v27, %v451_v32 }
 0x318   :  { %v459_v42 = vadd.f32 %v458_v29, %v454_v34  ;;  %v460_v44 = vadd.f32 %v458_v29, %v455_v33  ;;  %v462_v47 = vadd.f32 %v458_v29, %v457_v36  ;;  %v461_v37 = vadd.f32 %v458_v29, %v456_v39 }
 0x31a   :  { %v463_v17 = vmax.f32 %v459_v42, 0.0  ;;  %v464_v20 = vmax.f32 %v460_v44, 0.0  ;;  %v466_v49 = vmax.f32 %v462_v47, 0.0  ;;  %v465_v16 = vmax.f32 %v461_v37, 0.0 }
 0x31c   :  { %v484_v19 = vrot.slane %v463_v17, 7  ;;  %557 = vmatmul.f32.vlgmr.msrb.gmra.mxu2 %v463_v17  ;;  %v570_v38 = vrot.slane %v463_v17, 1  ;;  %v571_v50 = vrot.slane %v464_v20, 1  ;;  %v487_v51 = vrot.slane %v466_v49, 7 }
 0x31d   :  { %v572_v53 = vrot.slane %v465_v16, 1  ;;  %v485_v46 = vrot.slane %v464_v20, 7  ;;  %v486_v59 = vrot.slane %v465_v16, 7  ;;  %v573_v60 = vrot.slane %v466_v49, 1 }
 0x31e   :  { %v576_v41 = vsel %vm263_vm2, %v570_v38, %v571_v50  ;;  %v491_v52 = vsel %vm176_vm1, %v487_v51, %v484_v19 }
 0x31f   :  { %615 = vmatmul.f32.vlgmr.msrb.gmra.mxu3 %v576_v41  ;;  %v492_v45 = vmul.f32 %v978_v56, %v491_v52  ;;  %v575_v54 = vsel %vm263_vm2, %v571_v50, %v572_v53  ;;  %v490_v57 = vsel %vm176_vm1, %v484_v19, %v485_v46  ;;  %v489_v61 = vsel %vm176_vm1, %v485_v46, %v486_v59 }
 0x320   :  { %v579_v55 = vmul.f32 %v995_v4, %v575_v54  ;;  %v574_v56 = vsel %vm263_vm2, %v572_v53, %v573_v60  ;;  %v494_v62 = vmul.f32 %v1007_v13, %v489_v61  ;;  %v577_v4 = vsel %vm263_vm2, %v573_v60, %v570_v38 }
 0x321   :  { %528 = vmatmul.f32.vlgmr.msrb.gmra.mxu1 %v492_v45  ;;  %v581_v63 = vmul.f32 %v1015_v18, %v577_v4  ;;  %v488_v0 = vsel %vm176_vm1, %v486_v59, %v487_v51 }
 0x324   :  { %560 = vmatmul.f32.gmra.mxu2 %v464_v20 }
 0x327   :  { %618 = vmatmul.f32.gmra.mxu3 %v579_v55 }
 0x329   :  { %531 = vmatmul.f32.gmra.mxu1 %v490_v57 }
 0x32c   :  { %563 = vmatmul.f32.gmra.mxu2 %v465_v16 }
 0x32f   :  { %621 = vmatmul.f32.gmra.mxu3 %v574_v56 }
 0x331   :  { %534 = vmatmul.f32.gmra.mxu1 %v494_v62 }
 0x334   :  { %566 = vmatmul.f32.gmra.mxu2 %v466_v49 }
 0x337   :  { %624 = vmatmul.f32.gmra.mxu3 %v581_v63 }
 0x339   :  { %537 = vmatmul.f32.gmra.mxu1 %v488_v0 }
 0x39e   :  { %v529_v1 = vpop.f32.mrf.mxu1 }
 0x39f   :  { %v558_v2 = vpop.f32.mrf.mxu2 }
 0x3a0   :  { %v559_v11 = vadd.f32 %v558_v2, %v529_v1 }
 0x3a2   :  { %v616_v3 = vpop.f32.mrf.mxu3 }
 0x3a3   :  { %v628_v18 = vadd.f32 %v616_v3, %v559_v11  ;;  %v762_v3 = vperm.slane %v1192_v24, 2 }
 0x3a6   :  { %v532_v5 = vpop.f32.mrf.mxu1 }
 0x3a7   :  { %v561_v6 = vpop.f32.mrf.mxu2 }
 0x3a8   :  { %v562_v9 = vadd.f32 %v561_v6, %v532_v5  ;;  %v767_v6 = vperm.slane %v1192_v24, 3 }
 0x3aa   :  { %v619_v7 = vpop.f32.mrf.mxu3 }
 0x3ab   :  { %v629_v14 = vadd.f32 %v619_v7, %v562_v9 }
 0x3ad   :  { %v632_v48 = vadd.f32 %v629_v14, %v628_v18 }
 0x3ae   :  { %v535_v8 = vpop.f32.mrf.mxu1 }
 0x3af   :  { %v564_v13 = vpop.f32.mrf.mxu2 }
 0x3b0   :  { %v565_v12 = vadd.f32 %v564_v13, %v535_v8 }
 0x3b2   :  { %v622_v10 = vpop.f32.mrf.mxu3 }
 0x3b3   :  { %v630_v15 = vadd.f32 %v622_v10, %v565_v12 }
 0x3b5   :  { %v633_v26 = vadd.f32 %v632_v48, %v630_v15 }
 0x3b6   :  { %v538_v22 = vpop.f32.mrf.mxu1 }
 0x3b7   :  { %v567_v23 = vpop.f32.mrf.mxu2 }
 0x3b8   :  { %v568_v28 = vadd.f32 %v567_v23, %v538_v22 }
 0x3ba   :  { %v625_v25 = vpop.f32.mrf.mxu3 }
 0x3bb   :  { %v631_v27 = vadd.f32 %v625_v25, %v568_v28 }
 0x3bd   :  { %v634_v29 = vadd.f32 %v633_v26, %v631_v27 }
 0x3bf   :  { %v635_v30 = vrot.slane %v634_v29, 4 }
 0x3c1   :  { %v636_v31 = vadd.f32 %v635_v30, %v634_v29 }
 0x3c3   :  { %v637_v21 = vrot.slane %v636_v31, 2 }
 0x3c5   :  { %v638_v32 = vadd.f32 %v637_v21, %v636_v31 }
 0x3c7   :  { %v639_v34 = vrot.slane %v638_v32, 1 }
 0x3c9   :  { %v640_v33 = vadd.f32 %v639_v34, %v638_v32 }
 0x3cb   :  { %657 = vmatmul.f32.vlgmr.msra.gmra.mxu0 %v640_v33 }
 0x448   :  { %v658_v36 = vpop.f32.mrf.mxu0 }
 0x449   :  { %v661_v39 = vmul.f32 0.001953125, %v658_v36 }
 0x44b   :  { %810 = vmatmul.msk.f32.vlgmr.msra.gmra.mxu1 %vm352_vm6, %v661_v39 }
 0x4c8   :  { %v682_v42 = vpop.f32.mrf.mxu1 }
 0x4c9   :  { %v685_v44 = vperm.slane %v682_v42, 0 }
 0x4cb   :  { %v686_v47 = vsub.f32 %v628_v18, %v685_v44  ;;  %v687_v37 = vsub.f32 %v629_v14, %v685_v44  ;;  %v688_v17 = vsub.f32 %v630_v15, %v685_v44  ;;  %v689_v20 = vsub.f32 %v631_v27, %v685_v44 }
 0x4cd   :  { %v690_v49 = vmul.f32 %v686_v47, %v686_v47  ;;  %v691_v16 = vmul.f32 %v687_v37, %v687_v37  ;;  %v692_v19 = vmul.f32 %v688_v17, %v688_v17  ;;  %v693_v50 = vmul.f32 %v689_v20, %v689_v20 }
 0x4cf   :  { %v694_v38 = vadd.f32 %v691_v16, %v690_v49 }
 0x4d1   :  { %v695_v51 = vadd.f32 %v694_v38, %v692_v19 }
 0x4d3   :  { %v696_v41 = vadd.f32 %v695_v51, %v693_v50 }
 0x4d5   :  { %v697_v52 = vrot.slane %v696_v41, 4 }
 0x4d7   :  { %v698_v53 = vadd.f32 %v697_v52, %v696_v41 }
 0x4d9   :  { %v699_v45 = vrot.slane %v698_v53, 2 }
 0x4db   :  { %v700_v54 = vadd.f32 %v699_v45, %v698_v53 }
 0x4dd   :  { %v701_v46 = vrot.slane %v700_v54, 1 }
 0x4df   :  { %v702_v55 = vadd.f32 %v701_v46, %v700_v54 }
 0x4e1   :  { %719 = vmatmul.f32.vlgmr.msra.gmra.mxu2 %v702_v55 }
 0x564   :  { %v720_v57 = vpop.f32.mrf.mxu2 }
 0x565   :  { %v723_v59 = vmul.f32 0.001953125, %v720_v57 }
 0x567   :  { %811 = vmatmul.msk.f32.vlgmr.msrb.gmra.mxu0 %vm352_vm6, %v723_v59 }
 0x5e4   :  { %v744_v60 = vpop.f32.mrf.mxu0 }
 0x5e5   :  { %v745_v61 = vadd.f32 1e-05, %v744_v60 }
 0x5e7   :  { %820 = vrsqrt.f32 %v745_v61  ;;  %vm753_vm11 = vweird.f32 %v745_v61 }
 0x5ed   :  { %v821_v56 = vpop.eup %820 }
 0x5ee   :  { %v748_v62 = vmul.f32 %v821_v56, %v745_v61  ;;  %vm754_vm10 = vweird.f32 %v821_v56 }
 0x5ef   :  { %vm755_vm12 = vmor %vm753_vm11, %vm754_vm10 }
 0x5f0   :  { %v749_v4 = vmul.f32 %v821_v56, %v748_v62 }
 0x5f2   :  { %v750_v63 = vmul.f32 0.5, %v749_v4 }
 0x5f4   :  { %v751_v0 = vsub.f32 1.5, %v750_v63 }
 0x5f6   :  { %v752_v1 = vmul.f32 %v821_v56, %v751_v0 }
 0x5f8   :  { %v756_v2 = vsel %vm755_vm12, %v821_v56, %v752_v1 }
 0x5f9   :  { %v757_v5 = vperm.slane %v756_v2, 0 }
 0x5fb   :  { %v758_v7 = vmul.f32 %v757_v5, %v686_v47  ;;  %v759_v8 = vmul.f32 %v757_v5, %v687_v37  ;;  %v760_v13 = vmul.f32 %v757_v5, %v688_v17  ;;  %v761_v9 = vmul.f32 %v757_v5, %v689_v20 }
 0x5fd   :  { %v763_v10 = vmul.f32 %v762_v3, %v758_v7  ;;  %v764_v11 = vmul.f32 %v762_v3, %v759_v8  ;;  %v765_v12 = vmul.f32 %v762_v3, %v760_v13  ;;  %v766_v14 = vmul.f32 %v762_v3, %v761_v9 }
 0x5ff   :  { %v768_v22 = vadd.f32 %v767_v6, %v763_v10  ;;  %v769_v18 = vadd.f32 %v767_v6, %v764_v11  ;;  %v770_v15 = vadd.f32 %v767_v6, %v765_v12  ;;  %v771_v23 = vadd.f32 %v767_v6, %v766_v14 }
 0x601   :  { %v772_v28 = vadd.f32 %v768_v22, %v964_v40  ;;  %v773_v48 = vadd.f32 %v769_v18, %v969_v43  ;;  %v774_v25 = vadd.f32 %v770_v15, %v987_v58  ;;  %v775_v24 = vadd.f32 %v771_v23, %v958_v35 }
 0x603   :  { %v776_v26 = vmax.f32 %v772_v28, 0.0  ;;  %v777_v27 = vmax.f32 %v773_v48, 0.0  ;;  %v778_v29 = vmax.f32 %v774_v25, 0.0  ;;  %v779_v30 = vmax.f32 %v775_v24, 0.0 }
 0x605   :  { %780 = vst [vmem:[#allocation7] sm:$0xff] %v776_v26 }
 0x606   :  { %781 = vst [vmem:[#allocation7 + $0x8] sm:$0xff] %v777_v27 }
 0x607   :  { %782 = vst [vmem:[#allocation7 + $0x10] sm:$0xff] %v778_v29 }
 0x608   :  { %783 = vst [vmem:[#allocation7 + $0x18] sm:$0xff] %v779_v30 }
 0x609   :  { %796 = dma.vmem_to_hbm [thread:$0]  %s789_s23, 512, %s791_s26, [#allocation4], %s901_s29, %s901_s29, %s902_s30  }
 0x60a   :  { %898 = dma.done.wait [#allocation4], 512  }
 0x60b   :  { %899 = vsyncadd [#allocation4], 4294966784 }
 0x60c   :  { %801 = vsyncpa [#allocation3], 1 }
 0x60d   :  { %802 = vsyncpa [#allocation6], 1 }
 0x60e   :  { %803 = vsyncpa [#allocation4], 1 }

</bundles_post_ra>
